<compile_context>
chip_gen: v7x
topology: tpu7x:2x2x1
jax: 0.10.0
libtpu: 0.0.40
codegen_flags: <defaults>
</compile_context>

<pallas_src>
import functools
import math

import jax
import jax.numpy as jnp
from jax import lax
from jax.experimental import pallas as pl
from jax.experimental.pallas import tpu as pltpu


def _geglu_kernel(x_ref, w_ref, b_ref, o_ref):
    tn = o_ref.shape[-1]
    x = x_ref[...]                                   # (tm, d_in)
    w = w_ref[0]                                     # (d_in, 2*tn)  pre-transposed once
    # One fused MXU matmul covering both the x-projection and the gate-projection.
    h = jnp.dot(x, w, preferred_element_type=jnp.float32)        # (tm, 2*tn) f32
    h = h + b_ref[0]                                 # bias (1, 2*tn) broadcasts
    h_x = h[:, :tn]
    h_g = h[:, tn:]
    inv_sqrt2 = jnp.float32(1.0 / math.sqrt(2.0))
    gelu_g = 0.5 * h_g * (1.0 + lax.erf(h_g * inv_sqrt2))        # exact GELU (F.gelu default)
    o_ref[...] = (h_x * gelu_g).astype(o_ref.dtype)


def _pick_tn(d_out, d_in, itemsize, max_block_bytes=8 * 1024 * 1024):
    # Keep the resident fused weight block (d_in, 2*tn) at a few MiB so it fits VMEM
    # comfortably even on v7x (64 MiB / TC). Use the full d_out when it is small.
    if 2 * d_out * d_in * itemsize <= max_block_bytes:
        return d_out
    for cand in (1024, 512, 256, 128):
        if d_out % cand == 0:
            return cand
    # TODO(synk): pad d_out to a multiple of 128 for huge, non-divisible d_out.
    return d_out


def prepare_geglu_params(w, b, *, tn=None):
    """ONE-TIME parameter re-layout. Call this outside the hot loop and cache the result.

    w: (2*d_out, d_in) PyTorch nn.Linear weight; b: (2*d_out,).
    Returns:
      wf: (n_tiles, d_in, 2*tn) -- tile j holds [W_x cols, W_g cols] for output columns
          [j*tn, (j+1)*tn), already transposed to (in, out) so the kernel never transposes.
      bf: (n_tiles, 1, 2*tn)
    """
    d_out2, d_in = w.shape
    d_out = d_out2 // 2
    if tn is None:
        tn = _pick_tn(d_out, d_in, w.dtype.itemsize)
    assert d_out % tn == 0, "tn must divide d_out"
    n_tiles = d_out // tn
    wx = w[:d_out].reshape(n_tiles, tn, d_in)
    wg = w[d_out:].reshape(n_tiles, tn, d_in)
    wf = jnp.concatenate([wx, wg], axis=1)           # (n_tiles, 2*tn, d_in)
    wf = jnp.transpose(wf, (0, 2, 1))                # (n_tiles, d_in, 2*tn)
    bx = b[:d_out].reshape(n_tiles, 1, tn)
    bg = b[d_out:].reshape(n_tiles, 1, tn)
    bf = jnp.concatenate([bx, bg], axis=2)           # (n_tiles, 1, 2*tn)
    return wf, bf


@functools.partial(jax.jit, static_argnames=("tm",))
def geglu_apply(x, wf, bf, *, tm=256):
    """Hot path: x (..., d_in) with prepared params -> (..., d_out)."""
    *lead, d_in = x.shape
    n_tiles, _, two_tn = wf.shape
    tn = two_tn // 2
    d_out = n_tiles * tn

    x2 = x.reshape(-1, d_in)
    m = x2.shape[0]

    # Row tile: large (default 256) for MXU utilization; 16-aligned covers bf16 packing.
    if m < tm:
        tm = max(16, -(-m // 16) * 16)
    m_pad = -(-m // tm) * tm
    if m_pad != m:
        x2 = jnp.pad(x2, ((0, m_pad - m), (0, 0)))   # handle ragged M

    grid = (n_tiles, m_pad // tm)                    # N outermost: weight block loaded once

    # Scoped-VMEM: just enough for our tiles (weights single-buffered, x/out double-
    # buffered, f32 temporaries), never above v7x's 64 MiB physical VMEM.
    itemsize = x2.dtype.itemsize
    est = (2 * tm * d_in * itemsize                  # x, double-buffered
           + d_in * 2 * tn * wf.dtype.itemsize       # fused weight block, single-buffered
           + 2 * tm * tn * itemsize                  # out, double-buffered
           + 4 * tm * 2 * tn * 4)                    # f32 h / gelu temporaries
    vmem_limit = int(min(64 * 1024 * 1024, max(32 * 1024 * 1024, 2 * est)))

    out = pl.pallas_call(
        _geglu_kernel,
        out_shape=jax.ShapeDtypeStruct((m_pad, d_out), x.dtype),
        grid_spec=pltpu.PrefetchScalarGridSpec(
            num_scalar_prefetch=0,
            grid=grid,
            in_specs=[
                # Activations: streamed over the inner M axis.
                pl.BlockSpec((tm, d_in), lambda j, i: (i, 0)),
                # Fused weight / bias blocks change only on the outer N axis ->
                # single-buffer them (halves their VMEM footprint, no re-DMA per row tile).
                pl.BlockSpec((1, d_in, 2 * tn), lambda j, i: (j, 0, 0),
                             pipeline_mode=pl.Buffered(1)),
                pl.BlockSpec((1, 1, 2 * tn), lambda j, i: (j, 0, 0),
                             pipeline_mode=pl.Buffered(1)),
            ],
            out_specs=pl.BlockSpec((tm, tn), lambda j, i: (i, j)),
        ),
        compiler_params=pltpu.CompilerParams(
            dimension_semantics=("parallel", "parallel"),   # both axes independent (v7x 2 TCs)
            vmem_limit_bytes=vmem_limit,
        ),
    )(x2, wf, bf)

    out = out[:m]
    return out.reshape(*lead, d_out)


def geglu(x, w, b, *, tm=256):
    """Convenience one-shot API. For repeated calls, run prepare_geglu_params() once and
    call geglu_apply() in the hot loop (the weight re-layout is a one-time cost)."""
    wf, bf = prepare_geglu_params(w, b)
    return geglu_apply(x, wf, bf, tm=tm)


def geglu_ref(x, w, b):
    """Pure-JAX reference mirroring the PyTorch module."""
    y = x @ w.T + b
    d_out = w.shape[0] // 2
    xh, gate = y[..., :d_out], y[..., d_out:]
    return xh * jax.nn.gelu(gate, approximate=False)


if __name__ == "__main__":
    key = jax.random.PRNGKey(0)
    batch, seq, d_in, d_out = 2, 8, 32, 32

    k1, k2, k3 = jax.random.split(key, 3)
    x = jax.random.normal(k1, (batch, seq, d_in), dtype=jnp.float32)
    # Deterministic "Linear(d_in, 2*d_out)" parameters (PyTorch weight layout: (2*d_out, d_in)).
    bound = 1.0 / math.sqrt(d_in)
    w = jax.random.uniform(k2, (2 * d_out, d_in), minval=-bound, maxval=bound, dtype=jnp.float32)
    b = jax.random.uniform(k3, (2 * d_out,), minval=-bound, maxval=bound, dtype=jnp.float32)

    wf, bf = prepare_geglu_params(w, b)          # one-time prep, outside the hot loop
    out = jax.block_until_ready(geglu_apply(x, wf, bf))
    ref = geglu_ref(x, w, b)

    assert out.shape == (batch, seq, d_out)
    assert jnp.allclose(out, ref, atol=1e-5, rtol=1e-5)
    print("KERNEL_OK")
</pallas_src>

<mosaic_0001>
module attributes {stable_mosaic.version = 11 : i64} {
  func.func @_geglu_kernel(%arg0: i32, %arg1: i32, %arg2: memref<16x32xf32, #tpu.memory_space<vmem>>, %arg3: memref<1x32x64xf32, #tpu.memory_space<vmem>>, %arg4: memref<1x1x64xf32, #tpu.memory_space<vmem>>, %arg5: memref<16x32xf32, #tpu.memory_space<vmem>>) attributes {dimension_semantics = [#tpu.dimension_semantics<parallel>, #tpu.dimension_semantics<parallel>], iteration_bounds = array<i64: 1, 1>, scalar_prefetch = 0 : i64, scratch_operands = 0 : i64, tpu.core_type = #tpu.core_type<tc>, window_params = [{transform_indices = @transform_0, window_bounds = array<i64: 16, 32>}, {pipeline_mode = #tpu.pipeline_mode<synchronous>, transform_indices = @transform_1, window_bounds = array<i64: 1, 32, 64>}, {pipeline_mode = #tpu.pipeline_mode<synchronous>, transform_indices = @transform_2, window_bounds = array<i64: 1, 1, 64>}, {transform_indices = @transform_3, window_bounds = array<i64: 16, 32>}]} {
    %c0 = arith.constant 0 : index
    %c0_0 = arith.constant 0 : index
    %0 = vector.load %arg2[%c0, %c0_0] : memref<16x32xf32, #tpu.memory_space<vmem>>, vector<16x32xf32>
    %c0_1 = arith.constant 0 : index
    %c0_2 = arith.constant 0 : index
    %c0_3 = arith.constant 0 : index
    %1 = vector.load %arg3[%c0_1, %c0_2, %c0_3] : memref<1x32x64xf32, #tpu.memory_space<vmem>>, vector<1x32x64xf32>
    %2 = vector.shape_cast %1 : vector<1x32x64xf32> to vector<32x64xf32>
    %cst = arith.constant dense<0.000000e+00> : vector<16x64xf32>
    %3 = tpu.matmul %0, %2, %cst {dimension_numbers = #tpu.dot_dimension_numbers<[1], [0], [0], [1], [0, 0, 1, 1], [], []>} : vector<16x32xf32>, vector<32x64xf32>, vector<16x64xf32> -> vector<16x64xf32>
    %c0_4 = arith.constant 0 : index
    %c0_5 = arith.constant 0 : index
    %c0_6 = arith.constant 0 : index
    %4 = vector.load %arg4[%c0_4, %c0_5, %c0_6] : memref<1x1x64xf32, #tpu.memory_space<vmem>>, vector<1x1x64xf32>
    %5 = vector.shape_cast %4 : vector<1x1x64xf32> to vector<1x64xf32>
    %6 = vector.broadcast %5 : vector<1x64xf32> to vector<16x64xf32>
    %7 = arith.addf %3, %6 : vector<16x64xf32>
    %8 = vector.extract_strided_slice %7 {offsets = [0, 0], sizes = [16, 32], strides = [1, 1]} : vector<16x64xf32> to vector<16x32xf32>
    %9 = vector.extract_strided_slice %7 {offsets = [0, 32], sizes = [16, 32], strides = [1, 1]} : vector<16x64xf32> to vector<16x32xf32>
    %cst_7 = arith.constant 5.000000e-01 : f32
    %10 = vector.broadcast %cst_7 : f32 to vector<16x32xf32>
    %11 = arith.mulf %10, %9 : vector<16x32xf32>
    %cst_8 = arith.constant 0.707106769 : f32
    %12 = vector.broadcast %cst_8 : f32 to vector<16x32xf32>
    %13 = arith.mulf %9, %12 : vector<16x32xf32>
    %14 = math.erf %13 : vector<16x32xf32>
    %cst_9 = arith.constant 1.000000e+00 : f32
    %15 = vector.broadcast %cst_9 : f32 to vector<16x32xf32>
    %16 = arith.addf %15, %14 : vector<16x32xf32>
    %17 = arith.mulf %11, %16 : vector<16x32xf32>
    %18 = arith.mulf %8, %17 : vector<16x32xf32>
    %c0_10 = arith.constant 0 : index
    %c0_11 = arith.constant 0 : index
    %19 = vector.load %arg5[%c0_10, %c0_11] : memref<16x32xf32, #tpu.memory_space<vmem>>, vector<16x32xf32>
    tpu.vector_store %arg5[%c0_10, %c0_11], %18 {strides = array<i32>} : memref<16x32xf32, #tpu.memory_space<vmem>>, vector<16x32xf32>,
    return
  }
  func.func @transform_0(%arg0: i32, %arg1: i32) -> (i32, i32) {
    %c0_i32 = arith.constant 0 : i32
    %c0_i32_0 = arith.constant 0 : i32
    return %arg1, %c0_i32 : i32, i32
  }
  func.func @transform_1(%arg0: i32, %arg1: i32) -> (i32, i32, i32) {
    %c0_i32 = arith.constant 0 : i32
    %c0_i32_0 = arith.constant 0 : i32
    %c0_i32_1 = arith.constant 0 : i32
    return %arg0, %c0_i32, %c0_i32_0 : i32, i32, i32
  }
  func.func @transform_2(%arg0: i32, %arg1: i32) -> (i32, i32, i32) {
    %c0_i32 = arith.constant 0 : i32
    %c0_i32_0 = arith.constant 0 : i32
    %c0_i32_1 = arith.constant 0 : i32
    return %arg0, %c0_i32, %c0_i32_0 : i32, i32, i32
  }
  func.func @transform_3(%arg0: i32, %arg1: i32) -> (i32, i32) {
    %c0_i32 = arith.constant 0 : i32
    return %arg1, %arg0 : i32, i32
  }
}

</mosaic_0001>

<bundles_post_ra>
// kernel: geglu_apply.1
= control target key start
LH: loop header
LB: loop body
LE: loop exit
PB: predicated region body
PF: predicated region fallthrough
CT: control target
= control target key end

     0   :  { %8 = vsyncpa [#allocation3], 0  ;;  %s366_s0 = inlined_call_operand.hbm [shape: f32[16,32], index: 0, kind: input, shape index: {}]   ;;  %s367_s1 = inlined_call_operand.hbm [shape: f32[1,32,64], index: 1, kind: input, shape index: {}]   ;;  %s368_s2 = inlined_call_operand.vmem [shape: f32[1,1,64], index: 2, kind: input, shape index: {}]   ;;  %s369_s3 = inlined_call_operand.hbm [shape: f32[16,32], index: 3, kind: output, shape index: {}]  }
   0x1   :  { %9 = vsyncpa [#allocation6], 0 }
   0x2   :  { %10 = vsyncpa [#allocation4], 0  ;;  %s288_s12 = smov [#allocation2]   ;;  %s216_s16 = scalar_lea.hbm %s366_s0, 256 }
   0x3   :  { %s16_s13 = sshll.u32 %s288_s12, 4  ;;  %p217_p0 = scmp.ne.s32.totalorder %s366_s0, %s216_s16  ;;  %s17_s13 = int_to_ptr.vmem [resolvable:$true] %s16_s13 }
   0x4   :  { %p220_p1 = scmp.lt.u32.totalorder %s216_s16, %s366_s0 }
   0x6   :  { %p222_p2 = pnand %p220_p1, %p217_p0 }
   0x8   :  { %225 = shalt.err (!%p222_p2)
}
   0x9   :  { %s226_s21 = scalar_lea.vmem %s17_s13, 256  ;;  %p231_p4 = scmp.lt.s32.totalorder %s17_s13, %s17_s13 }
   0xa   :  { %p227_p3 = scmp.ne.s32.totalorder %s17_s13, %s226_s21  ;;  %p232_p5 = scmp.lt.s32.totalorder %s226_s21, %s226_s21 }
   0xc   :  { %p233_p6 = por %p232_p5, %p231_p4 }
   0xe   :  { %p234_p7 = pnand %p233_p6, %p227_p3 }
  0x10   :  { %237 = shalt.err (!%p234_p7)
}
  0x11   :  { %s289_s22 = smov 128   ;;  %s290_s23 = smov 8  }
  0x12   :  { %22 = dma.hbm_to_vmem [thread:$0]  %s366_s0, 256, %s17_s13, [#allocation3], %s289_s22, %s289_s22, %s290_s23  }
  0x13   :  { %s291_s26 = smov [#allocation5]   ;;  %s238_s30 = scalar_lea.hbm %s367_s1, 512 }
  0x14   :  { %s28_s27 = sshll.u32 %s291_s26, 4  ;;  %p239_p8 = scmp.ne.s32.totalorder %s367_s1, %s238_s30  ;;  %s29_s27 = int_to_ptr.vmem [resolvable:$true] %s28_s27 }
  0x15   :  { %p242_p9 = scmp.lt.u32.totalorder %s238_s30, %s367_s1 }
  0x17   :  { %p244_p10 = pnand %p242_p9, %p239_p8 }
  0x19   :  { %247 = shalt.err (!%p244_p10)
}
  0x1a   :  { %s248_s8 = scalar_lea.vmem %s29_s27, 512  ;;  %p253_p12 = scmp.lt.s32.totalorder %s29_s27, %s29_s27 }
  0x1b   :  { %p249_p11 = scmp.ne.s32.totalorder %s29_s27, %s248_s8  ;;  %p254_p13 = scmp.lt.s32.totalorder %s248_s8, %s248_s8 }
  0x1d   :  { %p255_p0 = por %p254_p13, %p253_p12 }
  0x1f   :  { %p256_p1 = pnand %p255_p0, %p249_p11 }
  0x21   :  { %259 = shalt.err (!%p256_p1)
}
  0x22   :  { %34 = dma.hbm_to_vmem [thread:$0]  %s367_s1, 512, %s29_s27, [#allocation6], %s289_s22, %s289_s22, %s290_s23  }
  0x23   :  { %282 = dma.done.wait [#allocation3], 256  }
  0x24   :  { %283 = vsyncadd [#allocation3], 4294967040 }
  0x25   :  { %284 = dma.done.wait [#allocation6], 512  }
  0x26   :  { %285 = vsyncadd [#allocation6], 4294966784  ;;  %vm56_vm0 = vcmask 261120   ;;  %v45_v0 = vld [vmem:[#allocation5] sm:$0xff]  ;;  %v46_v1 = vld [vmem:[#allocation5 + $0x8] sm:$0xff]  ;;  %s292_s11 = smov 96  }
  0x27   :  { %v47_v2 = vld [vmem:[#allocation5 + $0x10] sm:$0xff]  ;;  %v198_v3 = vpack.c.bf16 %v46_v1, %v45_v0  ;;  %v48_v4 = vld [vmem:[#allocation5 + $0x18] sm:$0xff] }
  0x28   :  { %v43_v5 = vld [vmem:[#allocation2] sm:$0xff]  ;;  %v202_v6 = vpack.c.bf16 %v48_v4, %v47_v2  ;;  %v44_v7 = vld [vmem:[#allocation2 + $0x8] sm:$0xff] }
  0x29   :  { %195 = vmatprep.mubr.msk.f32.mxu0 %vm56_vm0, %v43_v5  ;;  %199 = vmatprep.subr.bf16.mxu0 %v198_v3  ;;  %v178_v8 = vld [vmem:[%s368_s2] ss:$0 sm:$0xff]  ;;  %s293_s2 = smov [#allocation7]  }
  0x2a   :  { %201 = vmatpush3.bf16.msra.mxu0 %v198_v3  ;;  %s165_s12 = sshll.u32 %s293_s2, 4  ;;  %s166_s12 = int_to_ptr.vmem [resolvable:$true] %s165_s12 }
  0x2b   :  { %203 = vmatprep.subr.bf16.mxu0 %v202_v6  ;;  %s260_s13 = scalar_lea.vmem %s166_s12, 256  ;;  %p265_p3 = scmp.lt.s32.totalorder %s166_s12, %s166_s12 }
  0x2c   :  { %p261_p2 = scmp.ne.s32.totalorder %s166_s12, %s260_s13  ;;  %p266_p4 = scmp.lt.s32.totalorder %s260_s13, %s260_s13 }
  0x2e   :  { %205 = vmatpush3.bf16.msra.mxu0 %v202_v6  ;;  %p267_p5 = por %p266_p4, %p265_p3 }
  0x30   :  { %p268_p6 = pnand %p267_p5, %p261_p2 }
  0x31   :  { %196 = vmatmul.mubr.msk.f32.vlgmr.msra.gmra.mrb[0].mxu0 %vm56_vm0, %v44_v7 }
 0x104   :  { %v197_v9 = vpop.f32.mrb[0].mxu0 }
 0x105   :  { %v135_v10 = vadd.f32 %v197_v9, %v178_v8  ;;  %v129_v11 = vpop.f32.mrb[1].mxu0 }
 0x106   :  { %v130_v12 = vadd.f32 %v178_v8, %v129_v11 }
 0x107   :  { %v141_v13 = vmul.f32 0.70710677, %v135_v10  ;;  %v139_v21 = vmul.f32 0.5, %v135_v10 }
 0x108   :  { %v140_v14 = vmul.f32 0.70710677, %v130_v12  ;;  %v138_v17 = vmul.f32 0.5, %v130_v12 }
 0x109   :  { %212 = verf.f32 %v141_v13 }
 0x10a   :  { %214 = verf.f32 %v140_v14 }
 0x113   :  { %v213_v15 = vpop.eup %212 }
 0x114   :  { %v215_v16 = vpop.eup %214  ;;  %v145_v20 = vadd.f32 1.0, %v213_v15 }
 0x115   :  { %v144_v18 = vadd.f32 1.0, %v215_v16 }
 0x116   :  { %v147_v22 = vmul.f32 %v145_v20, %v139_v21 }
 0x117   :  { %v146_v19 = vmul.f32 %v144_v18, %v138_v17 }
 0x119   :  { %150 = vrot.lane.b32.xlu0 %v146_v19, %s292_s11 }
 0x11d   :  { %152 = vrot.lane.b32.xlu0 %v147_v22, %s292_s11 }
 0x18b   :  { %v151_v23 = vpop.permute.xlu0 %150 }
 0x18c   :  { %v156_v24 = vmul.f32 %v151_v23, %v130_v12 }
 0x18e   :  { %158 = vst.msk [vmem:[#allocation7] sm:$0xff] %vm56_vm0, %v156_v24 }
 0x18f   :  { %v153_v25 = vpop.permute.xlu0 %152 }
 0x190   :  { %v157_v26 = vmul.f32 %v153_v25, %v135_v10 }
 0x192   :  { %159 = vst.msk [vmem:[#allocation7 + $0x8] sm:$0xff] %vm56_vm0, %v157_v26 }
 0x193   :  { %271 = shalt.err (!%p268_p6)
}
 0x194   :  { %s272_s16 = scalar_lea.hbm %s369_s3, 256 }
 0x195   :  { %p273_p7 = scmp.ne.s32.totalorder %s369_s3, %s272_s16  ;;  %p276_p8 = scmp.lt.u32.totalorder %s272_s16, %s369_s3 }
 0x197   :  { %p278_p9 = pnand %p276_p8, %p273_p7 }
 0x199   :  { %281 = shalt.err (!%p278_p9)
}
 0x19a   :  { %171 = dma.vmem_to_hbm [thread:$0]  %s166_s12, 256, %s369_s3, [#allocation4], %s289_s22, %s289_s22, %s290_s23  }
 0x19b   :  { %286 = dma.done.wait [#allocation4], 256  }
 0x19c   :  { %287 = vsyncadd [#allocation4], 4294967040 }
 0x19d   :  { %175 = vsyncpa [#allocation3], 1 }
 0x19e   :  { %176 = vsyncpa [#allocation6], 1 }
 0x19f   :  { %177 = vsyncpa [#allocation4], 1 }

</bundles_post_ra>
